<compile_context>
chip_gen: v6e
topology: v6e:2x2x1
jax: 0.10.0
libtpu: 0.0.40
codegen_flags: <defaults>
</compile_context>

<pallas_src>
import functools
import math

import jax
import jax.numpy as jnp
from jax import lax
from jax.experimental import pallas as pl
from jax.experimental.pallas import tpu as pltpu

_VMEM_BUDGET = 24 * 1024 * 1024   # target for 2*in + 2*out + acc per-step footprint
_VMEM_LIMIT = 32 * 1024 * 1024    # explicit scoped-VMEM limit (fits v5e/v6e/v7x physical)


def _sum_kernel(x_ref, o_ref, acc_ref, *, r_total, br, keepdims):
    """Reduce axis 1 of the current block into a resident accumulator (P3)."""
    r = pl.program_id(2)

    @pl.when(r == 0)
    def _init():
        acc_ref[...] = jnp.zeros_like(acc_ref)

    x = x_ref[...]
    if r_total % br:  # static check: mask only when the reduction axis is ragged
        idx = r * br + lax.broadcasted_iota(jnp.int32, x.shape, 1)
        x = jnp.where(idx < r_total, x, jnp.zeros_like(x))
    acc_ref[...] += jnp.sum(x, axis=1, dtype=acc_ref.dtype, keepdims=keepdims)

    @pl.when(r == pl.num_programs(2) - 1)
    def _writeback():
        o_ref[...] = acc_ref[...].astype(o_ref.dtype)


def _pick_block(extent, want, align):
    """Largest block <= want along an axis of size `extent`; multiple of
    `align` unless it equals the full extent (Pallas (8,128) layout rule)."""
    if want >= extent or extent <= align:
        return extent
    return max(align, (min(want, extent) // align) * align)


def _acc_out_dtypes(dtype):
    if jnp.issubdtype(dtype, jnp.floating):
        return jnp.promote_types(dtype, jnp.float32), dtype
    if dtype == jnp.bool_:
        return jnp.int32, jnp.int32
    if jnp.issubdtype(dtype, jnp.integer):
        acc = jnp.promote_types(dtype, jnp.int32)
        return acc, acc
    return dtype, dtype


def sum_along_dim(x, dim, *, vmem_budget=_VMEM_BUDGET):
    """Pallas TPU equivalent of torch.Tensor.sum(dim=dim)."""
    ndim = x.ndim
    dim = dim % ndim
    out_shape = x.shape[:dim] + x.shape[dim + 1:]
    acc_dtype, out_dtype = _acc_out_dtypes(x.dtype)

    if x.size == 0:
        return jnp.zeros(out_shape, out_dtype)

    L = math.prod(x.shape[:dim])          # dims before the reduced axis
    R = x.shape[dim]                      # reduced axis
    T = math.prod(x.shape[dim + 1:])      # dims after the reduced axis
    last_axis = (T == 1)                  # reducing the trailing (lane) axis

    in_isz = x.dtype.itemsize
    out_isz = jnp.dtype(out_dtype).itemsize
    acc_isz = jnp.dtype(acc_dtype).itemsize

    def footprint(bl, br, bt):
        oc = 1 if last_axis else bt
        return (2 * bl * br * bt * in_isz      # double-buffered input block
                + 2 * bl * oc * out_isz        # double-buffered output block
                + bl * oc * acc_isz)           # accumulator scratch

    # Block selection: tile L first (pure parallel), then T (lanes), then R
    # (reduction axis — needs the accumulator).
    bl, br, bt = L, R, T
    if footprint(bl, br, bt) > vmem_budget:
        bl = _pick_block(L, max(1, vmem_budget // footprint(1, R, T)), 8)
    if footprint(bl, br, bt) > vmem_budget and not last_axis:
        bt = _pick_block(T, max(1, vmem_budget // footprint(bl, R, 1)), 128)
    if footprint(bl, br, bt) > vmem_budget:
        fixed = footprint(bl, 0, bt)
        per_r = 2 * bl * bt * in_isz
        want = max(1, (vmem_budget - fixed) // per_r) if vmem_budget > fixed else 1
        br = _pick_block(R, want, 128 if last_axis else 8)

    grid = (pl.cdiv(L, bl),
            1 if last_axis else pl.cdiv(T, bt),
            pl.cdiv(R, br))

    if last_axis:
        # (L, R) -> (L, 1): R sits on lanes; output trailing dim is 1 but the
        # output is only 1/R of the input bytes, so masked stores are cheap.
        x_in = x.reshape(L, R)
        in_spec = pl.BlockSpec((bl, br), lambda l, t, r: (l, r))
        out_spec = pl.BlockSpec((bl, 1), lambda l, t, r: (l, 0))
        call_out_shape = (L, 1)
        acc_shape = (bl, 1)
        keepdims = True
    else:
        # (L, R, T) -> (L, T): T stays on lanes -> lane-dense unmasked stores.
        x_in = x.reshape(L, R, T)
        in_spec = pl.BlockSpec((bl, br, bt), lambda l, t, r: (l, r, t))
        out_spec = pl.BlockSpec((bl, bt), lambda l, t, r: (l, t))
        call_out_shape = (L, T)
        acc_shape = (bl, bt)
        keepdims = False

    vmem_limit = int(max(_VMEM_LIMIT, footprint(bl, br, bt) + (2 << 20)))

    out2d = pl.pallas_call(
        functools.partial(_sum_kernel, r_total=R, br=br, keepdims=keepdims),
        out_shape=jax.ShapeDtypeStruct(call_out_shape, out_dtype),
        grid=grid,
        in_specs=[in_spec],
        out_specs=out_spec,
        scratch_shapes=[pltpu.VMEM(acc_shape, acc_dtype)],
        compiler_params=pltpu.CompilerParams(
            dimension_semantics=("parallel", "parallel", "arbitrary"),
            vmem_limit_bytes=vmem_limit,
        ),
    )(x_in)

    return out2d.reshape(out_shape)


if __name__ == "__main__":
    k0, k1, k2, k3 = jax.random.split(jax.random.PRNGKey(0), 4)

    # Small, TPU-friendly shapes consistent with the module (Sum over a dim).
    x4 = jax.random.normal(k0, (2, 4, 16, 128), dtype=jnp.float32)
    x2 = jax.random.normal(k1, (64, 256), dtype=jnp.float32)          # 2-D path
    x_big = jax.random.normal(k2, (1024, 8, 512), dtype=jnp.float32)  # exercises L-tiling
    x_int = jax.random.randint(k3, (8, 16, 128), 0, 100, dtype=jnp.int32)

    fn = jax.jit(sum_along_dim, static_argnames=("dim",))

    cases = [
        (x4, 1), (x4, -1), (x4, 0), (x4, 2),   # middle / last / first axes
        (x2, 0), (x2, 1),                      # 2-D input (previously un-tiled path)
        (x_big, 1),                            # tiled grid with ragged leading tail
        (x_int, 1),                            # integer accumulation path
    ]
    for arr, dim in cases:
        out = jax.block_until_ready(fn(arr, dim=dim))
        ref = jnp.sum(arr, axis=dim)
        assert out.shape == ref.shape, (dim, out.shape, ref.shape)
        assert out.dtype == ref.dtype, (dim, out.dtype, ref.dtype)
        if jnp.issubdtype(arr.dtype, jnp.floating):
            assert jnp.allclose(out, ref, atol=1e-5, rtol=1e-5), f"mismatch dim={dim}"
        else:
            assert jnp.array_equal(out, ref), f"mismatch dim={dim}"

    print("KERNEL_OK")
</pallas_src>

<mosaic_0001>
module attributes {stable_mosaic.version = 11 : i64} {
  func.func @_sum_kernel(%arg0: i32, %arg1: i32, %arg2: i32, %arg3: memref<2x4x2048xf32, #tpu.memory_space<vmem>>, %arg4: memref<2x2048xf32, #tpu.memory_space<vmem>>, %arg5: memref<2x2048xf32, #tpu.memory_space<vmem>>) attributes {dimension_semantics = [#tpu.dimension_semantics<parallel>, #tpu.dimension_semantics<parallel>, #tpu.dimension_semantics<arbitrary>], iteration_bounds = array<i64: 1, 1, 1>, scalar_prefetch = 0 : i64, scratch_operands = 1 : i64, tpu.core_type = #tpu.core_type<tc>, window_params = [{transform_indices = @transform_0, window_bounds = array<i64: 2, 4, 2048>}, {transform_indices = @transform_1, window_bounds = array<i64: 2, 2048>}]} {
    %c0_i32 = arith.constant 0 : i32
    %0 = arith.cmpi eq, %arg2, %c0_i32 : i32
    %1 = arith.extui %0 : i1 to i32
    %c0_i32_0 = arith.constant 0 : i32
    %2 = arith.cmpi ne, %1, %c0_i32_0 : i32
    scf.if %2 {
      %cst_9 = arith.constant 0.000000e+00 : f32
      %11 = vector.broadcast %cst_9 : f32 to vector<2x2048xf32>
      %c0_10 = arith.constant 0 : index
      %c0_11 = arith.constant 0 : index
      %12 = vector.load %arg5[%c0_10, %c0_11] : memref<2x2048xf32, #tpu.memory_space<vmem>>, vector<2x2048xf32>
      tpu.vector_store %arg5[%c0_10, %c0_11], %11 {strides = array<i32>} : memref<2x2048xf32, #tpu.memory_space<vmem>>, vector<2x2048xf32>,
    } else {
    }
    %c0 = arith.constant 0 : index
    %c0_1 = arith.constant 0 : index
    %c0_2 = arith.constant 0 : index
    %3 = vector.load %arg3[%c0, %c0_1, %c0_2] : memref<2x4x2048xf32, #tpu.memory_space<vmem>>, vector<2x4x2048xf32>
    %c0_3 = arith.constant 0 : index
    %c0_4 = arith.constant 0 : index
    %4 = vector.load %arg5[%c0_3, %c0_4] : memref<2x2048xf32, #tpu.memory_space<vmem>>, vector<2x2048xf32>
    %cst = arith.constant dense<0.000000e+00> : vector<2x2048xf32>
    %5 = vector.multi_reduction <add>, %3, %cst [1] : vector<2x4x2048xf32> to vector<2x2048xf32>
    %6 = arith.addf %4, %5 : vector<2x2048xf32>
    %c0_5 = arith.constant 0 : index
    %c0_6 = arith.constant 0 : index
    %7 = vector.load %arg5[%c0_5, %c0_6] : memref<2x2048xf32, #tpu.memory_space<vmem>>, vector<2x2048xf32>
    tpu.vector_store %arg5[%c0_5, %c0_6], %6 {strides = array<i32>} : memref<2x2048xf32, #tpu.memory_space<vmem>>, vector<2x2048xf32>,
    %c0_i32_7 = arith.constant 0 : i32
    %8 = arith.cmpi eq, %arg2, %c0_i32_7 : i32
    %9 = arith.extui %8 : i1 to i32
    %c0_i32_8 = arith.constant 0 : i32
    %10 = arith.cmpi ne, %9, %c0_i32_8 : i32
    scf.if %10 {
      %c0_9 = arith.constant 0 : index
      %c0_10 = arith.constant 0 : index
      %11 = vector.load %arg5[%c0_9, %c0_10] : memref<2x2048xf32, #tpu.memory_space<vmem>>, vector<2x2048xf32>
      %c0_11 = arith.constant 0 : index
      %c0_12 = arith.constant 0 : index
      %12 = vector.load %arg4[%c0_11, %c0_12] : memref<2x2048xf32, #tpu.memory_space<vmem>>, vector<2x2048xf32>
      tpu.vector_store %arg4[%c0_11, %c0_12], %11 {strides = array<i32>} : memref<2x2048xf32, #tpu.memory_space<vmem>>, vector<2x2048xf32>,
    } else {
    }
    return
  }
  func.func @transform_0(%arg0: i32, %arg1: i32, %arg2: i32) -> (i32, i32, i32) {
    %c0_i32 = arith.constant 0 : i32
    return %arg0, %arg2, %arg1 : i32, i32, i32
  }
  func.func @transform_1(%arg0: i32, %arg1: i32, %arg2: i32) -> (i32, i32) {
    %c0_i32 = arith.constant 0 : i32
    return %arg0, %arg1 : i32, i32
  }
}

</mosaic_0001>

<bundles_post_ra>
// kernel: sum_along_dim.1
= control target key start
LH: loop header
LB: loop body
LE: loop exit
PB: predicated region body
PF: predicated region fallthrough
CT: control target
= control target key end

     0   :  { %vm84_vm0 = vcmask 1043456   ;;  %v555_v13 = vmov 1983009808   ;;  %v346_v15 = vlaneseq  ;;  %vm482_vm1 = vcmask 1041409   ;;  %s831_s0 = inlined_call_operand.vmem [shape: f32[2,4,2048], index: 0, kind: input, shape index: {}]   ;;  %s832_s1 = inlined_call_operand.vmem [shape: f32[2,2048], index: 1, kind: output, shape index: {}]  }
   0x1   :  { %v16_v0 = vld [vmem:[%s831_s0] sm:$0xff]  ;;  %v17_v1 = vld [vmem:[%s831_s0 + $0x8] sm:$0xff]  ;;  %v18_v2 = vld [vmem:[%s831_s0 + $0x10] sm:$0xff]  ;;  %v604_v14 = vunpack.c.l.s4 %v555_v13  ;;  %vm484_vm2 = vcmask 1043459   ;;  %vm486_vm3 = vcmask 1045509   ;;  %vm488_vm4 = vcmask 1047559  }
   0x2   :  { %v19_v3 = vld [vmem:[%s831_s0 + $0x18] sm:$0xff]  ;;  %v581_v4 = vld [vmem:[%s831_s0 + $0x20] sm:$0xff]  ;;  %v586_v5 = vld [vmem:[%s831_s0 + $0x28] sm:$0xff]  ;;  %v52_v6 = vcombine.high %v16_v0, %v16_v0  ;;  %v85_v7 = vsel %vm84_vm0, %v16_v0, 0.0  ;;  %v53_v11 = vcombine.high %v17_v1, %v17_v1  ;;  %v54_v19 = vcombine.high %v18_v2, %v18_v2 }
   0x3   :  { %v592_v8 = vld [vmem:[%s831_s0 + $0x30] sm:$0xff]  ;;  %v597_v9 = vld [vmem:[%s831_s0 + $0x38] sm:$0xff]  ;;  %v602_v10 = vld [vmem:[%s831_s0 + $0x40] sm:$0xff]  ;;  %v86_v12 = vrot.slane %v85_v7, 4  ;;  %v55_v20 = vcombine.high %v19_v3, %v19_v3  ;;  %v56_v21 = vcombine.high %v581_v4, %v581_v4  ;;  %v57_v23 = vcombine.high %v586_v5, %v586_v5 }
   0x4   :  { %v609_v16 = vld [vmem:[%s831_s0 + $0x48] sm:$0xff]  ;;  %v614_v17 = vld [vmem:[%s831_s0 + $0x50] sm:$0xff]  ;;  %v619_v18 = vld [vmem:[%s831_s0 + $0x58] sm:$0xff]  ;;  %v92_v22 = vsel %vm84_vm0, %v52_v6, 0.0  ;;  %v58_v24 = vcombine.high %v592_v8, %v592_v8  ;;  %v59_v25 = vcombine.high %v597_v9, %v597_v9  ;;  %v60_v27 = vcombine.high %v602_v10, %v602_v10 }
   0x5   :  { %v87_v26 = vadd.f32 %v86_v12, %v85_v7  ;;  %v61_v28 = vcombine.high %v609_v16, %v609_v16  ;;  %v62_v29 = vcombine.high %v614_v17, %v614_v17  ;;  %v93_v30 = vrot.slane %v92_v22, 4  ;;  %v643_v35 = vld [vmem:[%s831_s0 + $0x60] sm:$0xff]  ;;  %v654_v56 = vld [vmem:[%s831_s0 + $0x68] sm:$0xff]  ;;  %v659_v61 = vld [vmem:[%s831_s0 + $0x70] sm:$0xff] }
   0x6   :  { %v63_v31 = vcombine.high %v619_v18, %v619_v18  ;;  %v99_v33 = vsel %vm84_vm0, %v17_v1, 0.0  ;;  %v106_v34 = vsel %vm84_vm0, %v53_v11, 0.0  ;;  %v113_v39 = vsel %vm84_vm0, %v18_v2, 0.0  ;;  %v664_v2 = vld [vmem:[%s831_s0 + $0x78] sm:$0xff] }
   0x7   :  { %v88_v32 = vrot.slane %v87_v26, 2  ;;  %v94_v36 = vadd.f32 %v93_v30, %v92_v22  ;;  %v100_v37 = vrot.slane %v99_v33, 4  ;;  %v107_v38 = vrot.slane %v106_v34, 4 }
   0x8   :  { %v114_v41 = vrot.slane %v113_v39, 4  ;;  %v120_v42 = vsel %vm84_vm0, %v54_v19, 0.0  ;;  %v127_v43 = vsel %vm84_vm0, %v19_v3, 0.0  ;;  %v64_v48 = vcombine.high %v643_v35, %v643_v35 }
   0x9   :  { %v89_v40 = vadd.f32 %v88_v32, %v87_v26  ;;  %v95_v44 = vrot.slane %v94_v36, 2  ;;  %v101_v45 = vadd.f32 %v100_v37, %v99_v33  ;;  %v108_v46 = vadd.f32 %v107_v38, %v106_v34 }
   0xa   :  { %v121_v47 = vrot.slane %v120_v42, 4  ;;  %v115_v49 = vadd.f32 %v114_v41, %v113_v39  ;;  %v128_v50 = vrot.slane %v127_v43, 4  ;;  %v134_v51 = vsel %vm84_vm0, %v55_v20, 0.0 }
   0xb   :  { %v96_v52 = vadd.f32 %v95_v44, %v94_v36  ;;  %v102_v53 = vrot.slane %v101_v45, 2  ;;  %v109_v54 = vrot.slane %v108_v46, 2  ;;  %v90_v57 = vrot.slane %v89_v40, 1 }
   0xc   :  { %v122_v55 = vadd.f32 %v121_v47, %v120_v42  ;;  %v116_v58 = vrot.slane %v115_v49, 2  ;;  %v129_v59 = vadd.f32 %v128_v50, %v127_v43  ;;  %v135_v60 = vrot.slane %v134_v51, 4 }
   0xd   :  { %v97_v62 = vrot.slane %v96_v52, 1  ;;  %v103_v63 = vadd.f32 %v102_v53, %v101_v45  ;;  %v110_v0 = vadd.f32 %v109_v54, %v108_v46  ;;  %v141_v11 = vsel %vm84_vm0, %v581_v4, 0.0 }
   0xe   :  { %v123_v1 = vrot.slane %v122_v55, 2  ;;  %v117_v3 = vadd.f32 %v116_v58, %v115_v49  ;;  %v130_v6 = vrot.slane %v129_v59, 2  ;;  %v136_v7 = vadd.f32 %v135_v60, %v134_v51 }
   0xf   :  { %v65_v12 = vcombine.high %v654_v56, %v654_v56  ;;  %v104_v13 = vrot.slane %v103_v63, 1  ;;  %v111_v19 = vrot.slane %v110_v0, 1  ;;  %v66_v22 = vcombine.high %v659_v61, %v659_v61 }
  0x10   :  { %v124_v20 = vadd.f32 %v123_v1, %v122_v55  ;;  %v118_v26 = vrot.slane %v117_v3, 1  ;;  %v137_v30 = vrot.slane %v136_v7, 2  ;;  %v142_v32 = vrot.slane %v141_v11, 4 }
  0x11   :  { %v67_v33 = vcombine.high %v664_v2, %v664_v2  ;;  %v674_v34 = vadd.f32 %v90_v57, %v89_v40  ;;  %v676_v36 = vadd.f32 %v97_v62, %v96_v52  ;;  %v148_v4 = vsel %vm84_vm0, %v56_v21, 0.0 }
  0x12   :  { %v679_v37 = vadd.f32 %v104_v13, %v103_v63  ;;  %v681_v38 = vadd.f32 %v111_v19, %v110_v0  ;;  %v131_v39 = vadd.f32 %v130_v6, %v129_v59  ;;  %v143_v41 = vadd.f32 %v142_v32, %v141_v11 }
  0x13   :  { %v125_v42 = vrot.slane %v124_v20, 1  ;;  %v149_v43 = vrot.slane %v148_v4, 4  ;;  %v155_v44 = vsel %vm84_vm0, %v586_v5, 0.0  ;;  %v162_v40 = vsel %vm84_vm0, %v57_v23, 0.0 }
  0x14   :  { %v689_v45 = vadd.f32 %v118_v26, %v117_v3  ;;  %v138_v46 = vadd.f32 %v137_v30, %v136_v7  ;;  %v144_v21 = vrot.slane %v143_v41, 2  ;;  %v156_v47 = vrot.slane %v155_v44, 4 }
  0x15   :  { %v150_v49 = vadd.f32 %v149_v43, %v148_v4  ;;  %v163_v50 = vrot.slane %v162_v40, 4  ;;  %v169_v51 = vsel %vm84_vm0, %v592_v8, 0.0  ;;  %v176_v52 = vsel %vm84_vm0, %v58_v24, 0.0 }
  0x16   :  { %v132_v53 = vrot.slane %v131_v39, 1  ;;  %v145_v54 = vadd.f32 %v144_v21, %v143_v41  ;;  %v157_v5 = vadd.f32 %v156_v47, %v155_v44  ;;  %v170_v55 = vrot.slane %v169_v51, 4 }
  0x17   :  { %v151_v23 = vrot.slane %v150_v49, 2  ;;  %v164_v57 = vadd.f32 %v163_v50, %v162_v40  ;;  %v177_v58 = vrot.slane %v176_v52, 4  ;;  %v183_v59 = vsel %vm84_vm0, %v597_v9, 0.0 }
  0x18   :  { %v139_v60 = vrot.slane %v138_v46, 1  ;;  %v158_v62 = vrot.slane %v157_v5, 2  ;;  %v171_v63 = vadd.f32 %v170_v55, %v169_v51  ;;  %v184_v0 = vrot.slane %v183_v59, 4 }
  0x19   :  { %v152_v1 = vadd.f32 %v151_v23, %v150_v49  ;;  %v165_v3 = vrot.slane %v164_v57, 2  ;;  %v178_v6 = vadd.f32 %v177_v58, %v176_v52  ;;  %v190_v8 = vsel %vm84_vm0, %v59_v25, 0.0 }
  0x1a   :  { %v146_v24 = vrot.slane %v145_v54, 1  ;;  %v159_v7 = vadd.f32 %v158_v62, %v157_v5  ;;  %v172_v11 = vrot.slane %v171_v63, 2  ;;  %v185_v13 = vadd.f32 %v184_v0, %v183_v59 }
  0x1b   :  { %v153_v19 = vrot.slane %v152_v1, 1  ;;  %v166_v26 = vadd.f32 %v165_v3, %v164_v57  ;;  %v179_v30 = vrot.slane %v178_v6, 2  ;;  %v191_v32 = vrot.slane %v190_v8, 4 }
  0x1c   :  { %v160_v4 = vrot.slane %v159_v7, 1  ;;  %v173_v41 = vadd.f32 %v172_v11, %v171_v63  ;;  %v186_v43 = vrot.slane %v185_v13, 2  ;;  %v197_v44 = vsel %vm84_vm0, %v602_v10, 0.0 }
  0x1d   :  { %v705_v40 = vadd.f32 %v125_v42, %v124_v20  ;;  %v167_v21 = vrot.slane %v166_v26, 1  ;;  %v180_v9 = vadd.f32 %v179_v30, %v178_v6  ;;  %v192_v47 = vadd.f32 %v191_v32, %v190_v8 }
  0x1e   :  { %v707_v25 = vadd.f32 %v132_v53, %v131_v39  ;;  %v709_v49 = vadd.f32 %v139_v60, %v138_v46  ;;  %v711_v50 = vadd.f32 %v146_v24, %v145_v54  ;;  %v198_v51 = vrot.slane %v197_v44, 4 }
  0x1f   :  { %v713_v52 = vadd.f32 %v153_v19, %v152_v1  ;;  %v174_v5 = vrot.slane %v173_v41, 1  ;;  %v193_v55 = vrot.slane %v192_v47, 2  ;;  %v204_v20 = vsel %vm84_vm0, %v60_v27, 0.0 }
  0x20   :  { %v719_v42 = vadd.f32 %v160_v4, %v159_v7  ;;  %v187_v23 = vadd.f32 %v186_v43, %v185_v13  ;;  %v199_v57 = vadd.f32 %v198_v51, %v197_v44  ;;  %v205_v39 = vrot.slane %v204_v20, 4 }
  0x21   :  { %v721_v53 = vadd.f32 %v167_v21, %v166_v26  ;;  %v181_v46 = vrot.slane %v180_v9, 1  ;;  %v211_v54 = vsel %vm84_vm0, %v609_v16, 0.0  ;;  %v218_v58 = vsel %vm84_vm0, %v61_v28, 0.0 }
  0x22   :  { %v194_v59 = vadd.f32 %v193_v55, %v192_v47  ;;  %v200_v10 = vrot.slane %v199_v57, 2  ;;  %v206_v60 = vadd.f32 %v205_v39, %v204_v20  ;;  %v212_v27 = vrot.slane %v211_v54, 4 }
  0x23   :  { %v729_v62 = vadd.f32 %v174_v5, %v173_v41  ;;  %v219_v63 = vrot.slane %v218_v58, 4  ;;  %v225_v0 = vsel %vm84_vm0, %v614_v17, 0.0  ;;  %v232_v1 = vsel %vm84_vm0, %v62_v29, 0.0 }
  0x24   :  { %v201_v3 = vadd.f32 %v200_v10, %v199_v57  ;;  %v207_v6 = vrot.slane %v206_v60, 2  ;;  %v213_v16 = vadd.f32 %v212_v27, %v211_v54  ;;  %v226_v8 = vrot.slane %v225_v0, 4 }
  0x25   :  { %v188_v28 = vrot.slane %v187_v23, 1  ;;  %v220_v24 = vadd.f32 %v219_v63, %v218_v58  ;;  %v233_v7 = vrot.slane %v232_v1, 4  ;;  %v239_v11 = vsel %vm84_vm0, %v619_v18, 0.0 }
  0x26   :  { %v195_v13 = vrot.slane %v194_v59, 1  ;;  %v208_v19 = vadd.f32 %v207_v6, %v206_v60  ;;  %v214_v26 = vrot.slane %v213_v16, 2  ;;  %v227_v30 = vadd.f32 %v226_v8, %v225_v0 }
  0x27   :  { %v221_v32 = vrot.slane %v220_v24, 2  ;;  %v234_v4 = vadd.f32 %v233_v7, %v232_v1  ;;  %v240_v41 = vrot.slane %v239_v11, 4  ;;  %v246_v17 = vsel %vm84_vm0, %v63_v31, 0.0 }
  0x28   :  { %v202_v29 = vrot.slane %v201_v3, 1  ;;  %v209_v43 = vrot.slane %v208_v19, 1  ;;  %v215_v44 = vadd.f32 %v214_v26, %v213_v16  ;;  %v228_v21 = vrot.slane %v227_v30, 2 }
  0x29   :  { %v222_v47 = vadd.f32 %v221_v32, %v220_v24  ;;  %v235_v51 = vrot.slane %v234_v4, 2  ;;  %v241_v5 = vadd.f32 %v240_v41, %v239_v11  ;;  %v247_v55 = vrot.slane %v246_v17, 4 }
  0x2a   :  { %v743_v20 = vadd.f32 %v181_v46, %v180_v9  ;;  %v745_v57 = vadd.f32 %v188_v28, %v187_v23  ;;  %v216_v39 = vrot.slane %v215_v44, 1  ;;  %v253_v54 = vsel %vm84_vm0, %v643_v35, 0.0 }
  0x2b   :  { %v223_v58 = vrot.slane %v222_v47, 1  ;;  %v229_v18 = vadd.f32 %v228_v21, %v227_v30  ;;  %v242_v10 = vrot.slane %v241_v5, 2  ;;  %v248_v31 = vadd.f32 %v247_v55, %v246_v17 }
  0x2c   :  { %v749_v60 = vadd.f32 %v195_v13, %v194_v59  ;;  %v751_v27 = vadd.f32 %v202_v29, %v201_v3  ;;  %v254_v63 = vrot.slane %v253_v54, 4  ;;  %v260_v9 = vsel %vm84_vm0, %v64_v48, 0.0 }
  0x2d   :  { %v757_v23 = vadd.f32 %v209_v43, %v208_v19  ;;  %v236_v46 = vadd.f32 %v235_v51, %v234_v4  ;;  %v243_v0 = vadd.f32 %v242_v10, %v241_v5  ;;  %v249_v1 = vrot.slane %v248_v31, 2 }
  0x2e   :  { %v759_v6 = vadd.f32 %v216_v39, %v215_v44  ;;  %v255_v16 = vadd.f32 %v254_v63, %v253_v54  ;;  %v261_v8 = vrot.slane %v260_v9, 4  ;;  %v267_v59 = vsel %vm84_vm0, %v654_v56, 0.0 }
  0x2f   :  { %v763_v3 = vadd.f32 %v223_v58, %v222_v47  ;;  %v230_v28 = vrot.slane %v229_v18, 1  ;;  %v250_v24 = vadd.f32 %v249_v1, %v248_v31  ;;  %v268_v7 = vrot.slane %v267_v59, 4 }
  0x30   :  { %v256_v35 = vrot.slane %v255_v16, 2  ;;  %v262_v11 = vadd.f32 %v261_v8, %v260_v9  ;;  %v274_v48 = vsel %vm84_vm0, %v65_v12, 0.0  ;;  %v281_v13 = vsel %vm84_vm0, %v659_v61, 0.0 }
  0x31   :  { %v237_v19 = vrot.slane %v236_v46, 1  ;;  %v244_v26 = vrot.slane %v243_v0, 1  ;;  %v269_v30 = vadd.f32 %v268_v7, %v267_v59  ;;  %v275_v32 = vrot.slane %v274_v48, 4 }
  0x32   :  { %v257_v4 = vadd.f32 %v256_v35, %v255_v16  ;;  %v263_v41 = vrot.slane %v262_v11, 2  ;;  %v282_v17 = vrot.slane %v281_v13, 4  ;;  %v288_v29 = vsel %vm84_vm0, %v66_v22, 0.0 }
  0x33   :  { %v251_v43 = vrot.slane %v250_v24, 1  ;;  %v270_v44 = vrot.slane %v269_v30, 2  ;;  %v276_v56 = vadd.f32 %v275_v32, %v274_v48  ;;  %v289_v21 = vrot.slane %v288_v29, 4 }
  0x34   :  { %v258_v12 = vrot.slane %v257_v4, 1  ;;  %v264_v47 = vadd.f32 %v263_v41, %v262_v11  ;;  %v283_v51 = vadd.f32 %v282_v17, %v281_v13  ;;  %v295_v5 = vsel %vm84_vm0, %v664_v2, 0.0 }
  0x35   :  { %v271_v55 = vadd.f32 %v270_v44, %v269_v30  ;;  %v277_v39 = vrot.slane %v276_v56, 2  ;;  %v290_v54 = vadd.f32 %v289_v21, %v288_v29  ;;  %v296_v58 = vrot.slane %v295_v5, 4 }
  0x36   :  { %v231_v10 = vadd.f32 %v230_v28, %v229_v18  ;;  %v238_v31 = vadd.f32 %v237_v19, %v236_v46  ;;  %v284_v63 = vrot.slane %v283_v51, 2  ;;  %v302_v61 = vsel %vm84_vm0, %v67_v33, 0.0 }
  0x37   :  { %v245_v22 = vadd.f32 %v244_v26, %v243_v0  ;;  %v278_v9 = vadd.f32 %v277_v39, %v276_v56  ;;  %v291_v1 = vrot.slane %v290_v54, 2  ;;  %v297_v16 = vadd.f32 %v296_v58, %v295_v5 }
  0x38   :  { %v252_v8 = vadd.f32 %v251_v43, %v250_v24  ;;  %v265_v59 = vrot.slane %v264_v47, 1  ;;  %v285_v7 = vadd.f32 %v284_v63, %v283_v51  ;;  %v303_v35 = vrot.slane %v302_v61, 4 }
  0x39   :  { %v259_v11 = vadd.f32 %v258_v12, %v257_v4  ;;  %v272_v48 = vrot.slane %v271_v55, 1  ;;  %v292_v13 = vadd.f32 %v291_v1, %v290_v54  ;;  %v298_v30 = vrot.slane %v297_v16, 2 }
  0x3a   :  { %v279_v18 = vrot.slane %v278_v9, 1  ;;  %v304_v46 = vadd.f32 %v303_v35, %v302_v61  ;;  %v341_v28 = vcombine.low %v674_v34, %v676_v36  ;;  %v345_v2 = vunpack.c.0.s8 %v604_v14 }
  0x3b   :  { %v286_v33 = vrot.slane %v285_v7, 1  ;;  %v299_v0 = vadd.f32 %v298_v30, %v297_v16  ;;  %v342_v19 = vcombine.low %v679_v37, %v681_v38  ;;  %v347_v24 = vshrl.u32 %v346_v15, 7 }
  0x3c   :  { %v266_v26 = vadd.f32 %v265_v59, %v264_v47  ;;  %v293_v32 = vrot.slane %v292_v13, 1  ;;  %v305_v4 = vrot.slane %v304_v46, 2  ;;  %v358_v41 = vcombine.low %v689_v45, %v705_v40 }
  0x3d   :  { %v300_v17 = vrot.slane %v299_v0, 1  ;;  %v348_v29 = vsub.s32 %v345_v2, %v347_v24  ;;  %v359_v34 = vcombine.low %v707_v25, %v709_v49  ;;  %v375_v14 = vcombine.low %v711_v50, %v713_v52 }
  0x3e   :  { %v273_v36 = vadd.f32 %v272_v48, %v271_v55  ;;  %v280_v43 = vadd.f32 %v279_v18, %v278_v9  ;;  %v306_v44 = vadd.f32 %v305_v4, %v304_v46  ;;  %v376_v15 = vcombine.low %v719_v42, %v721_v53 }
  0x3f   :  { %v287_v37 = vadd.f32 %v286_v33, %v285_v7  ;;  %v349_v38 = vrot.slane %v341_v28, %v348_v29  ;;  %v356_v56 = vrot.slane %v342_v19, %v348_v29  ;;  %v392_v45 = vcombine.low %v729_v62, %v743_v20 }
  0x40   :  { %v294_v40 = vadd.f32 %v293_v32, %v292_v13  ;;  %v301_v21 = vadd.f32 %v300_v17, %v299_v0  ;;  %v307_v12 = vrot.slane %v306_v44, 1  ;;  %v393_v25 = vcombine.low %v745_v57, %v749_v60 }
  0x41   :  { %v366_v49 = vrot.slane %v358_v41, %v348_v29  ;;  %v373_v50 = vrot.slane %v359_v34, %v348_v29  ;;  %v383_v52 = vrot.slane %v375_v14, %v348_v29  ;;  %v409_v47 = vcombine.low %v751_v27, %v757_v23 }
  0x42   :  { %v308_v51 = vadd.f32 %v307_v12, %v306_v44  ;;  %v357_v42 = vcombine.low %v349_v38, %v356_v56  ;;  %v390_v53 = vrot.slane %v376_v15, %v348_v29  ;;  %v410_v5 = vcombine.low %v759_v6, %v763_v3 }
  0x43   :  { %v400_v55 = vrot.slane %v392_v45, %v348_v29  ;;  %v417_v62 = vrot.slane %v409_v47, %v348_v29  ;;  %v426_v20 = vcombine.low %v231_v10, %v238_v31  ;;  %v427_v39 = vcombine.low %v245_v22, %v252_v8 }
  0x44   :  { %v424_v54 = vrot.slane %v410_v5, %v348_v29  ;;  %v443_v58 = vcombine.low %v259_v11, %v266_v26  ;;  %v444_v63 = vcombine.low %v273_v36, %v280_v43  ;;  %v460_v57 = vcombine.low %v287_v37, %v294_v40 }
  0x45   :  { %v407_v60 = vrot.slane %v393_v25, %v348_v29  ;;  %v434_v61 = vrot.slane %v426_v20, %v348_v29  ;;  %v441_v9 = vrot.slane %v427_v39, %v348_v29  ;;  %v461_v1 = vcombine.low %v301_v21, %v308_v51 }
  0x46   :  { %v425_v16 = vcombine.low %v417_v62, %v424_v54  ;;  %v451_v27 = vrot.slane %v443_v58, %v348_v29  ;;  %v458_v23 = vrot.slane %v444_v63, %v348_v29  ;;  %v468_v59 = vrot.slane %v460_v57, %v348_v29 }
  0x47   :  { %v374_v7 = vcombine.low %v366_v49, %v373_v50  ;;  %v442_v35 = vcombine.low %v434_v61, %v441_v9  ;;  %v475_v48 = vrot.slane %v461_v1, %v348_v29  ;;  %v391_v6 = vcombine.low %v383_v52, %v390_v53 }
  0x48   :  { %v459_v3 = vcombine.low %v451_v27, %v458_v23  ;;  %v481_v10 = vrot.slane %v425_v16, 7  ;;  %v408_v31 = vcombine.low %v400_v55, %v407_v60 }
  0x49   :  { %v476_v22 = vcombine.low %v468_v59, %v475_v48  ;;  %v492_v8 = vrot.slane %v442_v35, 7 }
  0x4a   :  { %v483_v11 = vsel %vm482_vm1, %v481_v10, %v357_v42  ;;  %v499_v13 = vrot.slane %v459_v3, 7 }
  0x4b   :  { %v485_v30 = vsel %vm484_vm2, %v481_v10, %v483_v11  ;;  %v493_v18 = vsel %vm482_vm1, %v492_v8, %v374_v7  ;;  %v506_v46 = vrot.slane %v476_v22, 7 }
  0x4c   :  { %v487_v28 = vsel %vm486_vm3, %v481_v10, %v485_v30  ;;  %v494_v2 = vsel %vm484_vm2, %v492_v8, %v493_v18  ;;  %v500_v33 = vsel %vm482_vm1, %v499_v13, %v391_v6 }
  0x4d   :  { %v489_v0 = vsel %vm488_vm4, %v481_v10, %v487_v28  ;;  %v495_v19 = vsel %vm486_vm3, %v492_v8, %v494_v2  ;;  %v501_v24 = vsel %vm484_vm2, %v499_v13, %v500_v33  ;;  %v507_v26 = vsel %vm482_vm1, %v506_v46, %v408_v31 }
  0x4e   :  { %v496_v32 = vsel %vm488_vm4, %v492_v8, %v495_v19  ;;  %v502_v4 = vsel %vm486_vm3, %v499_v13, %v501_v24  ;;  %v508_v41 = vsel %vm484_vm2, %v506_v46, %v507_v26  ;;  %530 = vst [vmem:[%s832_s1] sm:$0xff] %v489_v0 }
  0x4f   :  { %v503_v17 = vsel %vm488_vm4, %v499_v13, %v502_v4  ;;  %v509_v29 = vsel %vm486_vm3, %v506_v46, %v508_v41  ;;  %531 = vst [vmem:[%s832_s1 + $0x8] sm:$0xff] %v496_v32 }
  0x50   :  { %v510_v34 = vsel %vm488_vm4, %v506_v46, %v509_v29  ;;  %532 = vst [vmem:[%s832_s1 + $0x10] sm:$0xff] %v503_v17 }
  0x51   :  { %533 = vst [vmem:[%s832_s1 + $0x18] sm:$0xff] %v510_v34 }

</bundles_post_ra>
